<compile_context>
chip_gen: v5e
topology: v5e:2x2
jax: 0.10.0
libtpu: 0.0.40
codegen_flags: <defaults>
</compile_context>

<pallas_src>
import math
from functools import partial

import jax
import jax.numpy as jnp
from jax import lax
from jax.experimental import pallas as pl
from jax.experimental.pallas import tpu as pltpu


# ---------------------------------------------------------------------------
# Kernel A (lane-packed path): block is (tr, W) with W = k*C a multiple of 128.
# Each packed row holds k original rows back-to-back; the segmented mean over
# groups of C lanes is computed with a 0/1 block-diagonal matrix on the MXU.
# The f32 operand is split into exact hi/lo bf16 halves so the single-pass
# bf16 MXU matmuls reproduce the f32 reduction to ~1e-5 relative error.
def _ln_packed_kernel(x_ref, w_ref, b_ref, s_ref, o_ref, *, inv_c):
    x = x_ref[...].astype(jnp.float32)            # (tr, W)
    s = s_ref[...]                                 # (W, W) bf16, 0/1 block-diag
    w = w_ref[...].astype(jnp.float32)             # (1, W)
    b = b_ref[...].astype(jnp.float32)             # (1, W)

    def seg_mean(v):
        # Exact hi/lo bf16 split: v == hi + lo up to ~2^-17 relative.
        hi = v.astype(jnp.bfloat16)
        lo = (v - hi.astype(jnp.float32)).astype(jnp.bfloat16)
        acc = jnp.dot(hi, s, preferred_element_type=jnp.float32)
        acc = acc + jnp.dot(lo, s, preferred_element_type=jnp.float32)
        return acc * inv_c                          # group mean, broadcast per lane

    mu = seg_mean(x)                                # per-group mean
    xc = x - mu
    var = seg_mean(xc * xc)                         # biased variance
    inv = lax.rsqrt(var + 1e-5)                     # EUP slot
    o_ref[...] = (xc * inv * w + b).astype(o_ref.dtype)


# ---------------------------------------------------------------------------
# Kernel B (simple path): reduction along the full last dim of the block
# (used when C >= 128, or when lane packing is not possible).
def _ln_simple_kernel(x_ref, w_ref, b_ref, o_ref, *, inv_c):
    x = x_ref[...].astype(jnp.float32)              # (tr, C)
    w = w_ref[...].astype(jnp.float32)              # (1, C)
    b = b_ref[...].astype(jnp.float32)              # (1, C)
    mu = jnp.sum(x, axis=-1, keepdims=True) * inv_c
    xc = x - mu
    var = jnp.sum(xc * xc, axis=-1, keepdims=True) * inv_c
    inv = lax.rsqrt(var + 1e-5)
    o_ref[...] = (xc * inv * w + b).astype(o_ref.dtype)


# ---------------------------------------------------------------------------
def _pick_row_tile(rows, width, itemsize, vmem_budget=24 << 20):
    """Pick the row-tile size.

    Budgets the *real* per-row VMEM footprint: double-buffered input + output
    tiles at the storage dtype plus ~4 f32 tile-sized intermediates; keeps at
    least 4 grid steps when rows allow (>= 2 steps per TensorCore on v7x so
    both cores still pipeline); keeps the sublane dim a multiple of 8.
    """
    if rows <= 8:
        return max(rows, 1)
    per_row_bytes = width * (4 * itemsize + 4 * 4)
    tr = max(8, vmem_budget // per_row_bytes)
    tr = min(tr, max(8, pl.cdiv(rows, 4)))          # >= 4 grid steps if possible
    tr = max(8, (tr // 8) * 8)                      # sublane multiple
    return min(tr, rows)


def withbias_layernorm(x, weight, bias):
    """x: (..., C); weight, bias: (C,). Returns array with x's shape/dtype."""
    orig_shape = x.shape
    C = int(orig_shape[-1])
    R = int(math.prod(orig_shape[:-1]))             # rows to normalize
    itemsize = jnp.dtype(x.dtype).itemsize

    # Lane packing: fold k rows into one lane-dense row of width W = k*C
    # (multiple of 128).  Free contiguous reshape; only when R divides evenly.
    k = 1
    if C < 128:
        k_min = 128 // math.gcd(C, 128)
        if R % k_min == 0:
            k = k_min
    W = k * C
    Rp = R // k

    x2 = x.reshape(Rp, W)                           # free row-major view
    w2 = jnp.tile(jnp.reshape(weight, (1, C)), (1, k))
    b2 = jnp.tile(jnp.reshape(bias, (1, C)), (1, k))

    tr = _pick_row_tile(Rp, W, itemsize)
    grid = (pl.cdiv(Rp, tr),)                       # partial last block: no pad/slice

    in_specs = [
        pl.BlockSpec((tr, W), lambda i: (i, 0)),
        pl.BlockSpec((1, W), lambda i: (0, 0)),
        pl.BlockSpec((1, W), lambda i: (0, 0)),
    ]
    args = [x2, w2, b2]

    if k > 1:
        # 0/1 block-diagonal "same group" matrix (exact in bf16); the 1/C
        # scaling is applied in f32 after the matmul so non-power-of-two C
        # stays exact.
        g = jnp.arange(W, dtype=jnp.int32) // C
        s1 = (g[:, None] == g[None, :]).astype(jnp.bfloat16)
        in_specs.append(pl.BlockSpec((W, W), lambda i: (0, 0)))
        args.append(s1)
        kernel = partial(_ln_packed_kernel, inv_c=1.0 / C)
    else:
        kernel = partial(_ln_simple_kernel, inv_c=1.0 / C)

    out = pl.pallas_call(
        kernel,
        out_shape=jax.ShapeDtypeStruct((Rp, W), x.dtype),
        grid=grid,
        in_specs=in_specs,
        out_specs=pl.BlockSpec((tr, W), lambda i: (i, 0)),
        compiler_params=pltpu.CompilerParams(
            dimension_semantics=("parallel",),
            vmem_limit_bytes=48 * 1024 * 1024,      # > every default, < v7x physical
        ),
    )(*args)

    return out.reshape(orig_shape)


# ---------------------------------------------------------------------------
# Pure-JAX reference (mirrors the PyTorch forward exactly, computed in f32).
def ref_layernorm(x, weight, bias):
    xf = x.astype(jnp.float32)
    mu = jnp.mean(xf, axis=-1, keepdims=True)
    var = jnp.mean((xf - mu) ** 2, axis=-1, keepdims=True)
    return (xf - mu) / jnp.sqrt(var + 1e-5) * weight + bias


if __name__ == "__main__":
    key = jax.random.PRNGKey(0)

    def run_case(shape, dtype, tol, kidx):
        C = shape[-1]
        kx, kw, kb = jax.random.split(jax.random.fold_in(key, kidx), 3)
        x = jax.random.normal(kx, shape, jnp.float32).astype(dtype)
        weight = 1.0 + 0.1 * jax.random.normal(kw, (C,), jnp.float32)
        bias = 0.1 * jax.random.normal(kb, (C,), jnp.float32)

        out = jax.block_until_ready(withbias_layernorm(x, weight, bias))
        ref = ref_layernorm(x, weight, bias)
        err = float(jnp.max(jnp.abs(out.astype(jnp.float32) - ref)))
        assert out.shape == x.shape and out.dtype == x.dtype, (out.shape, out.dtype)
        assert err < tol, f"shape={shape} dtype={dtype} max abs diff {err} >= {tol}"

    # NAFNet-style usage: (B, H*W, C), LayerNorm over C.
    run_case((2, 256, 32), jnp.float32, 1e-3, 0)   # lane-packed path (C=32 -> W=128)
    run_case((3, 7, 48), jnp.float32, 1e-3, 1)     # fallback path + partial last block
    run_case((2, 8, 256), jnp.float32, 1e-3, 2)    # simple path, C already lane-dense
    run_case((2, 256, 32), jnp.bfloat16, 5e-2, 3)  # bf16 storage, packed path

    print("KERNEL_OK")
</pallas_src>

<mosaic_0001>
module attributes {stable_mosaic.version = 11 : i64} {
  func.func @_ln_packed_kernel(%arg0: i32, %arg1: memref<32x128xf32, #tpu.memory_space<vmem>>, %arg2: memref<1x128xf32, #tpu.memory_space<vmem>>, %arg3: memref<1x128xf32, #tpu.memory_space<vmem>>, %arg4: memref<128x128xbf16, #tpu.memory_space<vmem>>, %arg5: memref<32x128xf32, #tpu.memory_space<vmem>>) attributes {dimension_semantics = [#tpu.dimension_semantics<parallel>], iteration_bounds = array<i64: 4>, scalar_prefetch = 0 : i64, scratch_operands = 0 : i64, tpu.core_type = #tpu.core_type<tc>, window_params = [{transform_indices = @transform_0, window_bounds = array<i64: 32, 128>}, {pipeline_mode = #tpu.pipeline_mode<synchronous>, transform_indices = @transform_1, window_bounds = array<i64: 1, 128>}, {pipeline_mode = #tpu.pipeline_mode<synchronous>, transform_indices = @transform_2, window_bounds = array<i64: 1, 128>}, {pipeline_mode = #tpu.pipeline_mode<synchronous>, transform_indices = @transform_3, window_bounds = array<i64: 128, 128>}, {transform_indices = @transform_4, window_bounds = array<i64: 32, 128>}]} {
    %c0 = arith.constant 0 : index
    %c0_0 = arith.constant 0 : index
    %0 = vector.load %arg1[%c0, %c0_0] : memref<32x128xf32, #tpu.memory_space<vmem>>, vector<32x128xf32>
    %c0_1 = arith.constant 0 : index
    %c0_2 = arith.constant 0 : index
    %1 = vector.load %arg4[%c0_1, %c0_2] : memref<128x128xbf16, #tpu.memory_space<vmem>>, vector<128x128xbf16>
    %c0_3 = arith.constant 0 : index
    %c0_4 = arith.constant 0 : index
    %2 = vector.load %arg2[%c0_3, %c0_4] : memref<1x128xf32, #tpu.memory_space<vmem>>, vector<1x128xf32>
    %c0_5 = arith.constant 0 : index
    %c0_6 = arith.constant 0 : index
    %3 = vector.load %arg3[%c0_5, %c0_6] : memref<1x128xf32, #tpu.memory_space<vmem>>, vector<1x128xf32>
    %4 = arith.truncf %0 : vector<32x128xf32> to vector<32x128xbf16>
    %5 = arith.extf %4 : vector<32x128xbf16> to vector<32x128xf32>
    %6 = arith.subf %0, %5 : vector<32x128xf32>
    %7 = arith.truncf %6 : vector<32x128xf32> to vector<32x128xbf16>
    %cst = arith.constant dense<0.000000e+00> : vector<32x128xf32>
    %8 = tpu.matmul %4, %1, %cst {dimension_numbers = #tpu.dot_dimension_numbers<[1], [0], [0], [1], [0, 0, 1, 1], [], []>} : vector<32x128xbf16>, vector<128x128xbf16>, vector<32x128xf32> -> vector<32x128xf32>
    %cst_7 = arith.constant dense<0.000000e+00> : vector<32x128xf32>
    %9 = tpu.matmul %7, %1, %cst_7 {dimension_numbers = #tpu.dot_dimension_numbers<[1], [0], [0], [1], [0, 0, 1, 1], [], []>} : vector<32x128xbf16>, vector<128x128xbf16>, vector<32x128xf32> -> vector<32x128xf32>
    %10 = arith.addf %8, %9 : vector<32x128xf32>
    %cst_8 = arith.constant 3.125000e-02 : f32
    %11 = vector.broadcast %cst_8 : f32 to vector<32x128xf32>
    %12 = arith.mulf %10, %11 : vector<32x128xf32>
    %13 = arith.subf %0, %12 : vector<32x128xf32>
    %14 = arith.mulf %13, %13 : vector<32x128xf32>
    %15 = arith.truncf %14 : vector<32x128xf32> to vector<32x128xbf16>
    %16 = arith.extf %15 : vector<32x128xbf16> to vector<32x128xf32>
    %17 = arith.subf %14, %16 : vector<32x128xf32>
    %18 = arith.truncf %17 : vector<32x128xf32> to vector<32x128xbf16>
    %cst_9 = arith.constant dense<0.000000e+00> : vector<32x128xf32>
    %19 = tpu.matmul %15, %1, %cst_9 {dimension_numbers = #tpu.dot_dimension_numbers<[1], [0], [0], [1], [0, 0, 1, 1], [], []>} : vector<32x128xbf16>, vector<128x128xbf16>, vector<32x128xf32> -> vector<32x128xf32>
    %cst_10 = arith.constant dense<0.000000e+00> : vector<32x128xf32>
    %20 = tpu.matmul %18, %1, %cst_10 {dimension_numbers = #tpu.dot_dimension_numbers<[1], [0], [0], [1], [0, 0, 1, 1], [], []>} : vector<32x128xbf16>, vector<128x128xbf16>, vector<32x128xf32> -> vector<32x128xf32>
    %21 = arith.addf %19, %20 : vector<32x128xf32>
    %cst_11 = arith.constant 3.125000e-02 : f32
    %22 = vector.broadcast %cst_11 : f32 to vector<32x128xf32>
    %23 = arith.mulf %21, %22 : vector<32x128xf32>
    %cst_12 = arith.constant 9.99999974E-6 : f32
    %24 = vector.broadcast %cst_12 : f32 to vector<32x128xf32>
    %25 = arith.addf %23, %24 : vector<32x128xf32>
    %26 = math.rsqrt %25 : vector<32x128xf32>
    %27 = arith.mulf %13, %26 : vector<32x128xf32>
    %28 = vector.broadcast %2 : vector<1x128xf32> to vector<32x128xf32>
    %29 = arith.mulf %27, %28 : vector<32x128xf32>
    %30 = vector.broadcast %3 : vector<1x128xf32> to vector<32x128xf32>
    %31 = arith.addf %29, %30 : vector<32x128xf32>
    %c0_13 = arith.constant 0 : index
    %c0_14 = arith.constant 0 : index
    %32 = vector.load %arg5[%c0_13, %c0_14] : memref<32x128xf32, #tpu.memory_space<vmem>>, vector<32x128xf32>
    tpu.vector_store %arg5[%c0_13, %c0_14], %31 {strides = array<i32>} : memref<32x128xf32, #tpu.memory_space<vmem>>, vector<32x128xf32>,
    return
  }
  func.func @transform_0(%arg0: i32) -> (i32, i32) {
    %c0_i32 = arith.constant 0 : i32
    %c0_i32_0 = arith.constant 0 : i32
    return %arg0, %c0_i32 : i32, i32
  }
  func.func @transform_1(%arg0: i32) -> (i32, i32) {
    %c0_i32 = arith.constant 0 : i32
    %c0_i32_0 = arith.constant 0 : i32
    %c0_i32_1 = arith.constant 0 : i32
    return %c0_i32, %c0_i32_0 : i32, i32
  }
  func.func @transform_2(%arg0: i32) -> (i32, i32) {
    %c0_i32 = arith.constant 0 : i32
    %c0_i32_0 = arith.constant 0 : i32
    %c0_i32_1 = arith.constant 0 : i32
    return %c0_i32, %c0_i32_0 : i32, i32
  }
  func.func @transform_3(%arg0: i32) -> (i32, i32) {
    %c0_i32 = arith.constant 0 : i32
    %c0_i32_0 = arith.constant 0 : i32
    %c0_i32_1 = arith.constant 0 : i32
    return %c0_i32, %c0_i32_0 : i32, i32
  }
  func.func @transform_4(%arg0: i32) -> (i32, i32) {
    %c0_i32 = arith.constant 0 : i32
    %c0_i32_0 = arith.constant 0 : i32
    return %arg0, %c0_i32 : i32, i32
  }
}

</mosaic_0001>

<bundles_post_ra>
// kernel: tpu_custom_call.1
= control target key start
LH: loop header
LB: loop body
LE: loop exit
PB: predicated region body
PF: predicated region fallthrough
CT: control target
= control target key end

     0   :  { %s1160_s0 = inlined_call_operand.hbm [shape: f32[128,128], index: 0, kind: input, shape index: {}]   ;;  %s1161_s1 = inlined_call_operand.hbm [shape: f32[1,128], index: 1, kind: input, shape index: {}]   ;;  %s1162_s2 = inlined_call_operand.vmem [shape: f32[1,128], index: 2, kind: input, shape index: {}]   ;;  %s1163_s3 = inlined_call_operand.hbm [shape: bf16[128,128], index: 3, kind: input, shape index: {}]   ;;  %s1164_s4 = inlined_call_operand.hbm [shape: f32[128,128], index: 4, kind: output, shape index: {}]  }
   0x1   :  { %1165 = sst [smem:[#allocation12_spill]] %s1161_s1 }
   0x2   :  { %1166 = sst [smem:[#allocation13_spill]] %s1163_s3 }
   0x3   :  { %9 = vsyncpa [#allocation3], 0 }
   0x4   :  { %11 = vsyncpa [#allocation3 + $0x1], 0 }
   0x5   :  { %12 = vsyncpa [#allocation6], 0 }
   0x6   :  { %13 = vsyncpa [#allocation4], 0 }
   0x7   :  { %15 = vsyncpa [#allocation4 + $0x1], 0  ;;  %s977_s15 = smov 0   ;;  %s979_s16 = smov 0  }
   0x8   :  { %s981_s17 = smov 0   ;;  %s983_s18 = smov 0  }
   0x9 LB: > { %s998_s19 = sadd.s32 4294967295, %s942_s18   ;;  %s639_s20 = sadd.s32 4294967294, %s942_s18   ;;  %s942_s18 = sphi %s983_s18, %s1178_s18   ;;  %s938_s17 = sphi %s981_s17, %s1177_s17   ;;  %s934_s16 = sphi %s979_s16, %s1176_s16   ;;  %s930_s15 = sphi %s977_s15, %s1175_s15  }
   0xa   : > { %s1002_s21 = sadd.s32 1, %s942_s18   ;;  %s28_s22 = sadd.s32 1, %s938_s17 }
   0xb   : > { %s25_s23 = ssub.s32 %s942_s18, %s1002_s21  ;;  %p35_p0 = scmp.ne.s32.totalorder %s938_s17, %s934_s16 }
   0xc   : > { %p26_p1 = scmp.eq.s32.totalorder %s25_s23, 0  ;;  %p36_p2 = scmp.eq.s32.totalorder %s942_s18, 0 }
   0xd   : > { %p41_p3 = scmp.ne.s32.totalorder %s934_s16, %s930_s15  ;;  %p42_p4 = scmp.eq.s32.totalorder %s998_s19, 0 }
   0xe   : > { %s1014_s24 = scalar_select %p26_p1, %s938_s17, %s28_s22  }
   0xf   : > { %p1016_p5 = por %p36_p2, %p35_p0  ;;  %p1022_p6 = por %p42_p4, %p41_p3 }
  0x10   : > { %p128_p7 = scmp.eq.s32.totalorder %s998_s19, 3  ;;  %p134_p8 = scmp.eq.s32.totalorder %s639_s20, 3 }
  0x11   : > { %p640_p9 = scmp.ge.s32.totalorder %s942_s18, 1  ;;  %p141_p10 = scmp.lt.s32.totalorder %s942_s18, 5 }
  0x12   : > { %p1029_p11 = por %p128_p7, %p35_p0  ;;  %p1033_p12 = por %p134_p8, %p41_p3 }
  0x13   : > { %p1037_p13 = pnand %p640_p9, %p141_p10  ;;  %s1172_s1 = sld [smem:[#allocation12_spill]] }
  0x14   : > { %s944_s7 = smov [#allocation5]   ;;  %p728_p2 = scmp.lt.s32.totalorder %s942_s18, 4 }
  0x15   : > { %p711_p1 = pneg %p1037_p13  ;;  %s155_s8 = sshll.u32 %s944_s7, 4  ;;  %s156_s8 = int_to_ptr.vmem [resolvable:$true] %s155_s8 }
  0x16   : > { %s1173_s3 = sld [smem:[#allocation13_spill]]  ;;  %p1054_p3 = pnand %p728_p2, %p1016_p5 }
  0x17   : > { %p712_p0 = pnand %p711_p1, %p42_p4  ;;  %s945_s13 = smov [#allocation7]  }
  0x18   : > { %s169_s14 = sshll.u32 %s945_s13, 4  ;;  %s183_s20 = sand.u32 1, %s938_s17   ;;  %s170_s14 = int_to_ptr.vmem [resolvable:$true] %s169_s14 }
  0x19   : > { %s153_s6 = sshll.u32 %s1172_s1, 4  ;;  %s946_s22 = smov 64   ;;  %s154_s6 = int_to_ptr.hbm [resolvable:$true] %s153_s6 }
  0x1a   : > { %714 = dma.hbm_to_vmem [thread:$0]  (!%p712_p0), %s154_s6, 16, %s156_s8, [#allocation6]  }
  0x1b   : > { %s947_s23 = smov 4   ;;  %s644_s30 = sshll.u32 %s183_s20, 5 }
  0x1c   : > { %s167_s11 = sshll.u32 %s1173_s3, 4  ;;  %s689_s5 = sshll.u32 %s942_s18, 5  ;;  %s168_s11 = int_to_ptr.hbm [resolvable:$true] %s167_s11 }
  0x1d   : > { %717 = dma.hbm_to_vmem [thread:$0]  (!%p712_p0), %s168_s11, 1024, %s170_s14, [#allocation6], %s946_s22, %s946_s22, %s947_s23  }
  0x1e   : > { %s192_s10 = scalar_lea.hbm %s1160_s0, %s689_s5  ;;  %s187_s6 = scalar_lea.vmem [#allocation2], %s644_s30 }
  0x1f   : > { %s195_s25 = sshll.u32 %s187_s6, 4  ;;  %s193_s8 = sshll.u32 %s192_s10, 4  ;;  %s196_s25 = int_to_ptr.vmem [resolvable:$true] %s195_s25  ;;  %s194_s8 = int_to_ptr.hbm [resolvable:$true] %s193_s8 }
  0x20   : > { %s184_s1 = scalar_lea.sflag [#allocation3], %s183_s20  ;;  %s842_s3 = sshra.s32 %s194_s8, 4  ;;  %s843_s3 = int_to_ptr.hbm [resolvable:$true] %s842_s3 }
  0x21   : > { %s844_s13 = scalar_lea.hbm %s843_s3, 32  ;;  %p846_p7 = pneg %p1054_p3 }
  0x22   : > { %p845_p5 = scmp.ne.s32.totalorder %s843_s3, %s844_s13  ;;  %s849_s22 = scalar_lea.hbm %s1160_s0, 128 }
  0x23   : > { %p850_p10 = scmp.lt.s32.totalorder %s843_s3, %s1160_s0  ;;  %p851_p1 = scmp.lt.s32.totalorder %s849_s22, %s844_s13 }
  0x24   : > { %p847_p8 = pnand %p846_p7, %p845_p5 }
  0x25   : > { %p852_p0 = por %p851_p1, %p850_p10 }
  0x26   : > { %p848_p9 = pneg %p847_p8 }
  0x28   : > { %p853_p2 = pnand %p852_p0, %p848_p9 }
  0x2a   : > { %856 = shalt.err (!%p853_p2)
}
  0x2b   : > { %s948_s20 = smov 128   ;;  %s949_s30 = smov 8  }
  0x2c   : > { %721 = dma.hbm_to_vmem [thread:$0]  (!%p1054_p3), %s194_s8, 512, %s196_s25, %s184_s1, %s948_s20, %s948_s20, %s949_s30  }
  0x2d   : > { %207 = sbr.rel (%p1037_p13) target bundleno = 425 (0x1a9), region = 36  ;;  %s1076_s7 = sand.u32 (!%p1037_p13), 1, %s934_s16  }
  0x2e   : > { %s648_s3 = sshll.u32 (!%p1037_p13), %s1076_s7, 5  ;;  %s210_s9 = scalar_lea.sflag (!%p1037_p13), [#allocation3], %s1076_s7 }
  0x2f   : > { %s1082_s10 = scalar_lea.vmem (!%p1037_p13), [#allocation2], %s648_s3 }
  0x32   : > { %917 = dma.done.wait (%p1022_p6), %s210_s9, 512  }
  0x33   : > { %919 = vsyncadd (%p1022_p6), %s210_s9, 4294966784 }
  0x34   : > { %921 = dma.done.wait (%p42_p4), [#allocation6], 1040  }
  0x35   : > { %923 = vsyncadd (%p42_p4), [#allocation6], 4294966256  ;;  %v697_v0 = vld [vmem:[#allocation7 + $0x38] sm:$0xff]  ;;  %v696_v1 = vld [vmem:[#allocation7 + $0x30] sm:$0xff]  ;;  %s1118_s29 = scalar_lea.vmem [#allocation8], %s648_s3  ;;  %s698_s12 = sshll.u32 %s998_s19, 5 }
  0x36   : > { %335 = vmatpush.bf16.msra.mxu0 %v697_v0  ;;  %366 = vmatpush.bf16.msra.mxu1 %v697_v0  ;;  %v695_v2 = vld [vmem:[#allocation7 + $0x28] sm:$0xff]  ;;  %v694_v3 = vld [vmem:[#allocation7 + $0x20] sm:$0xff]  ;;  %v693_v4 = vld [vmem:[#allocation7 + $0x18] sm:$0xff]  ;;  %s543_s8 = scalar_lea.hbm %s1164_s4, %s698_s12  ;;  %s544_s13 = sshll.u32 %s1118_s29, 4  ;;  %s545_s13 = int_to_ptr.vmem [resolvable:$true] %s544_s13 }
  0x37   : > { %442 = vmatpush.bf16.msra.mxu3 %v697_v0  ;;  %411 = vmatpush.bf16.msra.mxu2 %v697_v0  ;;  %v251_v5 = vld [vmem:[%s1082_s10] sm:$0xff]  ;;  %v252_v6 = vld [vmem:[%s1082_s10 + $0x8] sm:$0xff]  ;;  %v692_v9 = vld [vmem:[#allocation7 + $0x10] sm:$0xff]  ;;  %s546_s11 = sshll.u32 %s543_s8, 4  ;;  %s532_s19 = scalar_lea.sflag [#allocation4], %s1076_s7  ;;  %s547_s11 = int_to_ptr.hbm [resolvable:$true] %s546_s11 }
  0x38   : > { %v273_v7 = vpack.c.bf16 %v251_v5, %v251_v5  ;;  %v274_v8 = vpack.c.bf16 %v252_v6, %v252_v6  ;;  %v691_v12 = vld [vmem:[#allocation7 + $0x8] sm:$0xff]  ;;  %v690_v17 = vld [vmem:[#allocation7] sm:$0xff]  ;;  %v254_v21 = vld [vmem:[%s1082_s10 + $0x18] sm:$0xff]  ;;  %s886_s14 = sshra.s32 %s547_s11, 4  ;;  %s892_s20 = scalar_lea.hbm %s1164_s4, 128  ;;  %s887_s14 = int_to_ptr.hbm [resolvable:$true] %s886_s14 }
  0x39   : > { %v253_v20 = vld [vmem:[%s1082_s10 + $0x10] sm:$0xff]  ;;  %v276_v23 = vpack.c.bf16 %v254_v21, %v254_v21  ;;  %s888_s22 = scalar_lea.hbm %s887_s14, 32  ;;  %p893_p3 = scmp.lt.s32.totalorder %s887_s14, %s1164_s4 }
  0x3a   : > { %336 = vmatpush.bf16.msra.mxu0 %v696_v1  ;;  %367 = vmatpush.bf16.msra.mxu1 %v696_v1  ;;  %v277_v10 = vunpack.c.l.bf16 %v273_v7  ;;  %v278_v11 = vunpack.c.l.bf16 %v274_v8  ;;  %v358_v15 = vunpack.c.l.b16 %v273_v7  ;;  %v359_v16 = vunpack.c.l.b16 %v274_v8  ;;  %p889_p4 = scmp.ne.s32.totalorder %s887_s14, %s888_s22  ;;  %p894_p5 = scmp.lt.s32.totalorder %s892_s20, %s888_s22 }
  0x3b   : > { %443 = vmatpush.bf16.msra.mxu3 %v696_v1  ;;  %412 = vmatpush.bf16.msra.mxu2 %v696_v1  ;;  %v275_v22 = vpack.c.bf16 %v253_v20, %v253_v20  ;;  %v280_v25 = vunpack.c.l.bf16 %v276_v23  ;;  %v361_v29 = vunpack.c.l.b16 %v276_v23 }
  0x3c   : > { %v281_v13 = vsub.f32 %v251_v5, %v277_v10  ;;  %v282_v14 = vsub.f32 %v252_v6, %v278_v11  ;;  %v362_v19 = vpack.c.b16 %v359_v16, %v358_v15  ;;  %p890_p6 = pnand %p889_p4, %p1029_p11  ;;  %p895_p7 = por %p894_p5, %p893_p3 }
  0x3d   : > { %v279_v24 = vunpack.c.l.bf16 %v275_v22  ;;  %v284_v27 = vsub.f32 %v254_v21, %v280_v25  ;;  %v360_v28 = vunpack.c.l.b16 %v275_v22 }
  0x3e   : > { %337 = vmatpush.bf16.msra.mxu0 %v695_v2  ;;  %368 = vmatpush.bf16.msra.mxu1 %v695_v2  ;;  %v285_v18 = vpack.c.bf16 %v282_v14, %v281_v13  ;;  %p891_p13 = pneg %p890_p6 }
  0x3f   : > { %444 = vmatpush.bf16.msra.mxu3 %v695_v2  ;;  %413 = vmatpush.bf16.msra.mxu2 %v695_v2  ;;  %v283_v26 = vsub.f32 %v253_v20, %v279_v24  ;;  %v363_v31 = vpack.c.b16 %v361_v29, %v360_v28 }
  0x40   : > { %p896_p8 = pnand %p895_p7, %p891_p13 }
  0x41   : > { %v286_v30 = vpack.c.bf16 %v284_v27, %v283_v26 }
  0x42   : > { %338 = vmatpush.bf16.msra.mxu0 %v694_v3  ;;  %369 = vmatpush.bf16.msra.mxu1 %v694_v3 }
  0x43   : > { %445 = vmatpush.bf16.msra.mxu3 %v694_v3  ;;  %414 = vmatpush.bf16.msra.mxu2 %v694_v3 }
  0x46   : > { %339 = vmatpush.bf16.msra.mxu0 %v693_v4  ;;  %370 = vmatpush.bf16.msra.mxu1 %v693_v4 }
  0x47   : > { %446 = vmatpush.bf16.msra.mxu3 %v693_v4  ;;  %415 = vmatpush.bf16.msra.mxu2 %v693_v4 }
  0x4a   : > { %340 = vmatpush.bf16.msra.mxu0 %v692_v9  ;;  %371 = vmatpush.bf16.msra.mxu1 %v692_v9 }
  0x4b   : > { %447 = vmatpush.bf16.msra.mxu3 %v692_v9  ;;  %416 = vmatpush.bf16.msra.mxu2 %v692_v9 }
  0x4e   : > { %341 = vmatpush.bf16.msra.mxu0 %v691_v12  ;;  %372 = vmatpush.bf16.msra.mxu1 %v691_v12 }
  0x4f   : > { %448 = vmatpush.bf16.msra.mxu3 %v691_v12  ;;  %417 = vmatpush.bf16.msra.mxu2 %v691_v12 }
  0x52   : > { %342 = vmatpush.bf16.msra.mxu0 %v690_v17  ;;  %373 = vmatpush.bf16.msra.mxu1 %v690_v17 }
  0x53   : > { %449 = vmatpush.bf16.msra.mxu3 %v690_v17  ;;  %418 = vmatpush.bf16.msra.mxu2 %v690_v17 }
  0x55   : > { %343 = vmatmul.bf16.vlgmr.msra.gmra.mxu0 %v285_v18  ;;  %374 = vmatmul.bf16.vlgmr.msra.gmra.mxu1 %v362_v19 }
  0x65   : > { %348 = vmatmul.bf16.gmra.mxu0 %v286_v30  ;;  %379 = vmatmul.bf16.gmra.mxu1 %v363_v31 }
  0xd2   : > { %v344_v32 = vpop.f32.mrf.mxu0  ;;  %v375_v33 = vpop.f32.mrf.mxu1 }
  0xd3   : > { %v376_v34 = vadd.f32 %v375_v33, %v344_v32 }
  0xd5   : > { %v385_v35 = vmul.f32 0.03125, %v376_v34 }
  0xd7   : > { %v1096_v36 = vsub.f32 %v251_v5, %v385_v35  ;;  %v772_v35 = vld [vmem:[#allocation5] ss:$0 sm:$0xff] }
  0xd9   : > { %v393_v39 = vmul.f32 %v1096_v36, %v1096_v36 }
  0xda   : > { %v346_v37 = vpop.f32.mrf.mxu0  ;;  %v377_v38 = vpop.f32.mrf.mxu1 }
  0xdb   : > { %v378_v40 = vadd.f32 %v377_v38, %v346_v37  ;;  %v397_v43 = vpack.c.bf16 %v393_v39, %v393_v39 }
  0xdd   : > { %v386_v41 = vmul.f32 0.03125, %v378_v40  ;;  %v401_v49 = vunpack.c.l.bf16 %v397_v43  ;;  %v434_v51 = vunpack.c.l.b16 %v397_v43  ;;  %v773_v43 = vld [vmem:[%s1162_s2] ss:$0 sm:$0xff] }
  0xdf   : > { %v1100_v42 = vsub.f32 %v252_v6, %v386_v41  ;;  %v405_v56 = vsub.f32 %v393_v39, %v401_v49 }
  0xe1   : > { %v394_v44 = vmul.f32 %v1100_v42, %v1100_v42 }
  0xe2   : > { %v349_v45 = vpop.f32.mrf.mxu0  ;;  %v380_v46 = vpop.f32.mrf.mxu1 }
  0xe3   : > { %v381_v47 = vadd.f32 %v380_v46, %v349_v45  ;;  %v398_v48 = vpack.c.bf16 %v394_v44, %v394_v44 }
  0xe5   : > { %v387_v50 = vmul.f32 0.03125, %v381_v47  ;;  %v435_v52 = vunpack.c.l.b16 %v398_v48  ;;  %v402_v53 = vunpack.c.l.bf16 %v398_v48 }
  0xe7   : > { %v1104_v54 = vsub.f32 %v253_v20, %v387_v50  ;;  %v438_v55 = vpack.c.b16 %v435_v52, %v434_v51  ;;  %v406_v57 = vsub.f32 %v394_v44, %v402_v53 }
  0xe9   : > { %450 = vmatmul.bf16.vlgmr.msra.gmra.mxu3 %v438_v55  ;;  %v409_v58 = vpack.c.bf16 %v406_v57, %v405_v56  ;;  %v395_v61 = vmul.f32 %v1104_v54, %v1104_v54 }
  0xea   : > { %v351_v59 = vpop.f32.mrf.mxu0  ;;  %v382_v60 = vpop.f32.mrf.mxu1 }
  0xeb   : > { %v383_v62 = vadd.f32 %v382_v60, %v351_v59  ;;  %419 = vmatmul.bf16.vlgmr.msra.gmra.mxu2 %v409_v58  ;;  %v399_v1 = vpack.c.bf16 %v395_v61, %v395_v61 }
  0xed   : > { %v388_v63 = vmul.f32 0.03125, %v383_v62  ;;  %v403_v4 = vunpack.c.l.bf16 %v399_v1  ;;  %v436_v5 = vunpack.c.l.b16 %v399_v1 }
  0xef   : > { %v1108_v0 = vsub.f32 %v254_v21, %v388_v63  ;;  %v407_v9 = vsub.f32 %v395_v61, %v403_v4 }
  0xf1   : > { %v396_v2 = vmul.f32 %v1108_v0, %v1108_v0 }
  0xf3   : > { %v400_v3 = vpack.c.bf16 %v396_v2, %v396_v2 }
  0xf5   : > { %v437_v6 = vunpack.c.l.b16 %v400_v3  ;;  %v404_v7 = vunpack.c.l.bf16 %v400_v3 }
  0xf7   : > { %v439_v8 = vpack.c.b16 %v437_v6, %v436_v5  ;;  %v408_v10 = vsub.f32 %v396_v2, %v404_v7 }
  0xf9   : > { %455 = vmatmul.bf16.gmra.mxu3 %v439_v8  ;;  %v410_v11 = vpack.c.bf16 %v408_v10, %v407_v9 }
  0xfb   : > { %424 = vmatmul.bf16.gmra.mxu2 %v410_v11 }
 0x16c   : > { %v451_v12 = vpop.f32.mrf.mxu3 }
 0x16e   : > { %v420_v13 = vpop.f32.mrf.mxu2 }
 0x16f   : > { %v452_v14 = vadd.f32 %v451_v12, %v420_v13 }
 0x171   : > { %v461_v15 = vmul.f32 0.03125, %v452_v14 }
 0x173   : > { %v465_v16 = vadd.f32 1e-05, %v461_v15 }
 0x174   : > { %v453_v17 = vpop.f32.mrf.mxu3 }
 0x175   : > { %774 = vrsqrt.f32 %v465_v16  ;;  %vm475_vm1 = vweird.f32 %v465_v16 }
 0x176   : > { %v422_v18 = vpop.f32.mrf.mxu2 }
 0x177   : > { %v454_v19 = vadd.f32 %v453_v17, %v422_v18 }
 0x179   : > { %v462_v20 = vmul.f32 0.03125, %v454_v19 }
 0x17b   : > { %v775_v21 = vpop.eup %774  ;;  %v466_v22 = vadd.f32 1e-05, %v462_v20 }
 0x17c   : > { %v470_v23 = vmul.f32 %v775_v21, %v465_v16  ;;  %v456_v24 = vpop.f32.mrf.mxu3  ;;  %vm476_vm0 = vweird.f32 %v775_v21 }
 0x17d   : > { %776 = vrsqrt.f32 %v466_v22  ;;  %vm477_vm2 = vmor %vm475_vm1, %vm476_vm0  ;;  %vm485_vm4 = vweird.f32 %v466_v22 }
 0x17e   : > { %v471_v25 = vmul.f32 %v775_v21, %v470_v23  ;;  %v425_v26 = vpop.f32.mrf.mxu2 }
 0x17f   : > { %v457_v27 = vadd.f32 %v456_v24, %v425_v26 }
 0x180   : > { %v472_v28 = vmul.f32 0.5, %v471_v25 }
 0x181   : > { %v463_v29 = vmul.f32 0.03125, %v457_v27 }
 0x182   : > { %v473_v30 = vsub.f32 1.5, %v472_v28 }
 0x183   : > { %v777_v31 = vpop.eup %776  ;;  %v467_v32 = vadd.f32 1e-05, %v463_v29 }
 0x184   : > { %v474_v33 = vmul.f32 %v775_v21, %v473_v30  ;;  %v480_v34 = vmul.f32 %v777_v31, %v466_v22  ;;  %v458_v39 = vpop.f32.mrf.mxu3  ;;  %vm486_vm3 = vweird.f32 %v777_v31 }
 0x185   : > { %778 = vrsqrt.f32 %v467_v32  ;;  %vm487_vm5 = vmor %vm485_vm4, %vm486_vm3  ;;  %vm495_vm7 = vweird.f32 %v467_v32 }
 0x186   : > { %v478_v37 = vsel %vm477_vm2, %v775_v21, %v474_v33  ;;  %v481_v38 = vmul.f32 %v777_v31, %v480_v34  ;;  %v427_v40 = vpop.f32.mrf.mxu2 }
 0x187   : > { %v509_v41 = vmul.f32 %v478_v37, %v1096_v36  ;;  %v459_v44 = vadd.f32 %v458_v39, %v427_v40 }
 0x188   : > { %v482_v45 = vmul.f32 0.5, %v481_v38 }
 0x189   : > { %v516_v46 = vmul.f32 %v772_v35, %v509_v41  ;;  %v464_v47 = vmul.f32 0.03125, %v459_v44 }
 0x18a   : > { %v483_v48 = vsub.f32 1.5, %v482_v45 }
 0x18b   : > { %v779_v49 = vpop.eup %778  ;;  %v523_v50 = vadd.f32 %v773_v43, %v516_v46  ;;  %v468_v51 = vadd.f32 1e-05, %v464_v47 }
 0x18c   : > { %v484_v52 = vmul.f32 %v777_v31, %v483_v48  ;;  %v490_v53 = vmul.f32 %v779_v49, %v467_v32  ;;  %vm496_vm6 = vweird.f32 %v779_v49 }
 0x18d   : > { %527 = vst [vmem:[%s1118_s29] sm:$0xff] %v523_v50  ;;  %780 = vrsqrt.f32 %v468_v51  ;;  %vm497_vm8 = vmor %vm495_vm7, %vm496_vm6  ;;  %vm505_vm10 = vweird.f32 %v468_v51 }
 0x18e   : > { %v488_v36 = vsel %vm487_vm5, %v777_v31, %v484_v52  ;;  %v491_v55 = vmul.f32 %v779_v49, %v490_v53 }
 0x18f   : > { %v510_v56 = vmul.f32 %v488_v36, %v1100_v42 }
 0x190   : > { %v492_v57 = vmul.f32 0.5, %v491_v55 }
 0x191   : > { %v517_v58 = vmul.f32 %v772_v35, %v510_v56 }
 0x192   : > { %v493_v59 = vsub.f32 1.5, %v492_v57 }
 0x193   : > { %v781_v60 = vpop.eup %780  ;;  %v524_v61 = vadd.f32 %v773_v43, %v517_v58 }
 0x194   : > { %v494_v62 = vmul.f32 %v779_v49, %v493_v59  ;;  %v500_v63 = vmul.f32 %v781_v60, %v468_v51  ;;  %vm506_vm9 = vweird.f32 %v781_v60 }
 0x195   : > { %528 = vst [vmem:[%s1118_s29 + $0x8] sm:$0xff] %v524_v61  ;;  %vm507_vm11 = vmor %vm505_vm10, %vm506_vm9 }
 0x196   : > { %v498_v1 = vsel %vm497_vm8, %v779_v49, %v494_v62  ;;  %v501_v2 = vmul.f32 %v781_v60, %v500_v63 }
 0x197   : > { %v511_v3 = vmul.f32 %v498_v1, %v1104_v54 }
 0x198   : > { %v502_v4 = vmul.f32 0.5, %v501_v2 }
 0x199   : > { %v518_v42 = vmul.f32 %v772_v35, %v511_v3 }
 0x19a   : > { %v503_v5 = vsub.f32 1.5, %v502_v4 }
 0x19b   : > { %v525_v6 = vadd.f32 %v773_v43, %v518_v42 }
 0x19c   : > { %v504_v7 = vmul.f32 %v781_v60, %v503_v5 }
 0x19d   : > { %529 = vst [vmem:[%s1118_s29 + $0x10] sm:$0xff] %v525_v6 }
 0x19e   : > { %v508_v8 = vsel %vm507_vm11, %v781_v60, %v504_v7 }
 0x19f   : > { %v512_v54 = vmul.f32 %v508_v8, %v1108_v0 }
 0x1a1   : > { %v519_v9 = vmul.f32 %v772_v35, %v512_v54 }
 0x1a3   : > { %v526_v10 = vadd.f32 %v773_v43, %v519_v9 }
 0x1a5   : > { %530 = vst [vmem:[%s1118_s29 + $0x18] sm:$0xff] %v526_v10 }
 0x1a6   : > { %899 = shalt.err (!%p896_p8)
}
 0x1a7   : > { %s950_s7 = smov 128   ;;  %s951_s9 = smov 8  }
 0x1a8   : > { %709 = dma.vmem_to_hbm [thread:$0]  (%p1029_p11), %s545_s13, 512, %s547_s11, %s532_s19, %s950_s7, %s950_s7, %s951_s9  }
 0x1a9 PF: > { %p731_p9 = scmp.ge.s32.totalorder %s942_s18, 2  ;;  %s561_s10 = sand.u32 1, %s930_s15  }
 0x1aa   : > { %s562_s1 = scalar_lea.sflag [#allocation4], %s561_s10 }
 0x1ab   : > { %p723_p10 = pnand %p731_p9, %p1033_p12 }
 0x1ad   : > { %p724_p1 = pneg %p723_p10 }
 0x1af   : > { %925 = dma.done.wait (%p724_p1), %s562_s1, 512  }
 0x1b0   : > { %927 = vsyncadd (%p724_p1), %s562_s1, 4294966784  ;;  %p18_p0 = scmp.ge.s32.totalorder %s1002_s21, 6   ;;  %s1175_s15 = smov %s934_s16 }
 0x1b1   : > { %s1176_s16 = smov %s938_s17  ;;  %s1177_s17 = smov %s1014_s24 }
 0x1b2   : > { %s1178_s18 = smov %s1002_s21  ;;  %20 = sbr.rel (!%p18_p0) target bundleno = 9 (0x9), region = 89 }
 0x1b7   :  { %568 = vsyncpa [#allocation3], 1 }
 0x1b8   :  { %570 = vsyncpa [#allocation3 + $0x1], 1 }
 0x1b9   :  { %571 = vsyncpa [#allocation6], 1 }
 0x1ba   :  { %572 = vsyncpa [#allocation4], 1 }
 0x1bb   :  { %574 = vsyncpa [#allocation4 + $0x1], 1 }

</bundles_post_ra>
